<compile_context>
chip_gen: v6e
topology: v6e:2x2x1
jax: 0.10.0
libtpu: 0.0.40
codegen_flags: <defaults>
</compile_context>

<pallas_src>
import jax
import jax.numpy as jnp
from jax.experimental import pallas as pl
from jax.experimental.pallas import tpu as pltpu


def _upsample_kernel(x_ref, w_ref, b_ref, o_ref):
    # x_ref: (TH, W, Cin)        -- TH image rows of W pixels, channel-minor (NHWC)
    # w_ref: (2, Cin, 2*Cout)    -- w_ref[kh][ci, kw*Cout + co] = weight[ci, co, kh, kw]
    # b_ref: (1, 2*Cout) f32     -- bias tiled over kw
    # o_ref: (TH, 2, W, 2*Cout)  -- o_ref[t, kh, w, kw*Cout + co]
    th, w_sz, cin = x_ref.shape
    c2 = b_ref.shape[-1]

    # Collapse the (row, pixel) dims for one big MXU matmul per kh half.
    # (W is kept a multiple of 8 by the tile picker whenever th > 1, so this is a
    #  tile-aligned, relayout-free reshape.)
    x = x_ref[...].reshape(th * w_sz, cin)
    b = b_ref[...]

    for kh in range(2):  # static 2x unroll; each half writes a contiguous output slab
        y = jnp.dot(x, w_ref[kh], preferred_element_type=jnp.float32) + b
        y = jnp.maximum(y, 0.0).astype(o_ref.dtype)          # f32 epilogue, cast at store
        o_ref[:, kh, :, :] = y.reshape(th, w_sz, c2)


def _round_up(x, m):
    return (x + m - 1) // m * m


def _pick_tile_rows(nh, w, cin, cout, itemsize,
                    vmem_block_budget=24 * 1024 * 1024, min_steps=8):
    """Pick how many image rows each grid step processes.

    Budgets the *padded* VMEM footprint (lane dim pads to 128, sublane dim to 8) of the
    double-buffered input + output blocks, caps it so it fits v7x's 64 MiB physical VMEM
    with headroom, keeps >= min_steps grid steps so the pipeline / both v7x TensorCores
    stay fed, and prefers a tile count that divides nh (no ragged last block, balanced
    work across cores).
    """
    in_row = _round_up(w, 8) * _round_up(cin, 128) * itemsize            # per image row
    out_row = 2 * _round_up(w, 8) * _round_up(2 * cout, 128) * itemsize  # per image row
    per_row = 2 * (in_row + out_row)                                     # x2 double buffer
    th = max(1, vmem_block_budget // per_row)
    if w % 8 != 0:
        th = 1  # keep in-kernel reshapes tile-aligned for odd widths
    th = min(th, nh)
    th = max(1, min(th, pl.cdiv(nh, min_steps)))
    # Prefer an exact divisor of nh within [th/2, th]: same throughput class, but no
    # masked ragged block and equal-size blocks for megacore sharding.
    lo = max(th // 2, 1)
    for cand in range(th, lo - 1, -1):
        if nh % cand == 0:
            return cand
    return th


def upsample_nhwc(x_nhwc, weight, bias, *, tile_rows=None):
    """ConvTranspose2d(k=2, s=2) + ReLU, NHWC in -> NHWC out (TPU-native fast path).

    x_nhwc: (N, H, W, Cin); weight: (Cin, Cout, 2, 2) (PyTorch ConvTranspose2d layout);
    bias: (Cout,).  Returns (N, 2H, 2W, Cout).
    """
    N, H, W, Cin = x_nhwc.shape
    Cout = weight.shape[1]
    NH = N * H
    itemsize = jnp.dtype(x_nhwc.dtype).itemsize

    th = tile_rows if tile_rows is not None else _pick_tile_rows(NH, W, Cin, Cout, itemsize)
    grid = (pl.cdiv(NH, th),)  # ragged last block (if any) is masked by Pallas

    # Free reshape: NHWC is already channel-minor.
    x3 = x_nhwc.reshape(NH, W, Cin)
    # (Cin, Cout, kh, kw) -> (kh, Cin, kw, Cout) -> (2, Cin, 2*Cout); columns ordered (kw, co).
    # Cast weights to the activation dtype (bf16 activations -> bf16 MXU matmul).
    wk = jnp.transpose(weight, (2, 0, 3, 1)).reshape(2, Cin, 2 * Cout).astype(x_nhwc.dtype)
    b2 = jnp.tile(bias, 2).reshape(1, 2 * Cout).astype(jnp.float32)

    out_itemsize = itemsize
    cost = pl.CostEstimate(
        flops=2 * NH * W * Cin * 4 * Cout,
        transcendentals=0,
        bytes_accessed=(NH * W * Cin * itemsize                 # x read
                        + NH * 4 * W * Cout * out_itemsize      # out write
                        + 4 * Cin * Cout * itemsize),           # weights
    )

    out4 = pl.pallas_call(
        _upsample_kernel,
        out_shape=jax.ShapeDtypeStruct((NH, 2, W, 2 * Cout), x_nhwc.dtype),
        grid_spec=pltpu.PrefetchScalarGridSpec(
            num_scalar_prefetch=0,
            grid=grid,
            in_specs=[
                pl.BlockSpec((th, W, Cin), lambda i: (i, 0, 0)),
                pl.BlockSpec((2, Cin, 2 * Cout), lambda i: (0, 0, 0)),   # resident (const idx)
                pl.BlockSpec((1, 2 * Cout), lambda i: (0, 0)),
            ],
            out_specs=pl.BlockSpec((th, 2, W, 2 * Cout), lambda i: (i, 0, 0, 0)),
        ),
        compiler_params=pltpu.CompilerParams(
            dimension_semantics=("parallel",),          # shard row tiles across TCs (v7x)
            vmem_limit_bytes=48 * 1024 * 1024,          # fits v5e/v6e/v7x; blocks budgeted <=24MiB
        ),
        cost_estimate=cost,
    )(x3, wk, b2)

    # (NH, 2, W, 2*Cout) row-major == (N, 2H, 2W, Cout) row-major: contiguous, free reshape.
    return out4.reshape(N, 2 * H, 2 * W, Cout)


def upsample(x_nchw, weight, bias, *, tile_rows=None):
    """PyTorch-layout parity wrapper (NCHW in / NCHW out), matching nn.Module semantics.

    The two transposes here exist only for interface parity with torch; inside a full
    network keep activations NHWC and call upsample_nhwc directly (zero extra HBM trips).
    """
    x_nhwc = jnp.transpose(x_nchw, (0, 2, 3, 1))
    y = upsample_nhwc(x_nhwc, weight, bias, tile_rows=tile_rows)
    return jnp.transpose(y, (0, 3, 1, 2))


def upsample_reference(x_nchw, weight, bias):
    # Direct einsum reference for ConvTranspose2d(k=2, s=2) + ReLU (NCHW).
    N, Cin, H, W = x_nchw.shape
    Cout = weight.shape[1]
    y = jnp.einsum("nchw,coij->nohiwj", x_nchw, weight)      # n, co, h, kh, w, kw
    y = y.reshape(N, Cout, 2 * H, 2 * W) + bias[None, :, None, None]
    return jnp.maximum(y, 0.0)


if __name__ == "__main__":
    key = jax.random.PRNGKey(0)
    k_x, k_w, k_b = jax.random.split(key, 3)

    N, Cin, Cout, H, W = 2, 4, 8, 16, 16
    x_nchw = jax.random.normal(k_x, (N, Cin, H, W), dtype=jnp.float32)
    # PyTorch ConvTranspose2d weight shape: (in_channels, out_channels, kH, kW)
    weight = jax.random.normal(k_w, (Cin, Cout, 2, 2), dtype=jnp.float32) * 0.1
    bias = jax.random.normal(k_b, (Cout,), dtype=jnp.float32) * 0.1

    ref = upsample_reference(x_nchw, weight, bias)

    # 1) NHWC-native fast path (no layout transposes around the kernel).
    x_nhwc = jnp.transpose(x_nchw, (0, 2, 3, 1))
    out_nhwc = jax.block_until_ready(jax.jit(upsample_nhwc)(x_nhwc, weight, bias))
    assert out_nhwc.shape == (N, 2 * H, 2 * W, Cout), out_nhwc.shape
    assert jnp.allclose(out_nhwc, jnp.transpose(ref, (0, 2, 3, 1)), atol=1e-5, rtol=1e-5), \
        "NHWC mismatch vs reference"

    # 2) PyTorch-layout parity path (NCHW in / NCHW out, same math as the nn.Module).
    out_nchw = jax.block_until_ready(jax.jit(upsample)(x_nchw, weight, bias))
    assert out_nchw.shape == (N, Cout, 2 * H, 2 * W), out_nchw.shape
    assert jnp.allclose(out_nchw, ref, atol=1e-5, rtol=1e-5), "NCHW mismatch vs reference"

    # 3) bf16 activations (halves HBM traffic of this bandwidth-bound op); accumulation,
    #    bias and ReLU stay in f32, only the store casts.
    out_bf16 = jax.block_until_ready(
        jax.jit(upsample_nhwc)(x_nhwc.astype(jnp.bfloat16), weight, bias))
    assert out_bf16.shape == (N, 2 * H, 2 * W, Cout), out_bf16.shape
    assert jnp.allclose(out_bf16.astype(jnp.float32),
                        jnp.transpose(ref, (0, 2, 3, 1)), atol=5e-2, rtol=5e-2), \
        "bf16 mismatch vs reference"

    print("KERNEL_OK")
</pallas_src>

<mosaic_0001>
module attributes {stable_mosaic.version = 11 : i64} {
  func.func @_upsample_kernel(%arg0: i32, %arg1: memref<4x16x4xf32, #tpu.memory_space<vmem>>, %arg2: memref<2x4x16xf32, #tpu.memory_space<vmem>>, %arg3: memref<1x16xf32, #tpu.memory_space<vmem>>, %arg4: memref<4x2x16x16xf32, #tpu.memory_space<vmem>>) attributes {dimension_semantics = [#tpu.dimension_semantics<parallel>], iteration_bounds = array<i64: 8>, scalar_prefetch = 0 : i64, scratch_operands = 0 : i64, tpu.core_type = #tpu.core_type<tc>, window_params = [{transform_indices = @transform_0, window_bounds = array<i64: 4, 16, 4>}, {pipeline_mode = #tpu.pipeline_mode<synchronous>, transform_indices = @transform_1, window_bounds = array<i64: 2, 4, 16>}, {pipeline_mode = #tpu.pipeline_mode<synchronous>, transform_indices = @transform_2, window_bounds = array<i64: 1, 16>}, {transform_indices = @transform_3, window_bounds = array<i64: 4, 2, 16, 16>}]} {
    %c0 = arith.constant 0 : index
    %c0_0 = arith.constant 0 : index
    %c0_1 = arith.constant 0 : index
    %0 = vector.load %arg1[%c0, %c0_0, %c0_1] : memref<4x16x4xf32, #tpu.memory_space<vmem>>, vector<4x16x4xf32>
    %1 = vector.shape_cast %0 : vector<4x16x4xf32> to vector<64x4xf32>
    %c0_2 = arith.constant 0 : index
    %c0_3 = arith.constant 0 : index
    %2 = vector.load %arg3[%c0_2, %c0_3] : memref<1x16xf32, #tpu.memory_space<vmem>>, vector<1x16xf32>
    %c0_4 = arith.constant 0 : index
    %c0_5 = arith.constant 0 : index
    %c0_6 = arith.constant 0 : index
    %3 = vector.load %arg2[%c0_4, %c0_5, %c0_6] : memref<2x4x16xf32, #tpu.memory_space<vmem>>, vector<1x4x16xf32>
    %4 = vector.shape_cast %3 : vector<1x4x16xf32> to vector<4x16xf32>
    %cst = arith.constant dense<0.000000e+00> : vector<64x16xf32>
    %5 = tpu.matmul %1, %4, %cst {dimension_numbers = #tpu.dot_dimension_numbers<[1], [0], [0], [1], [0, 0, 1, 1], [], []>} : vector<64x4xf32>, vector<4x16xf32>, vector<64x16xf32> -> vector<64x16xf32>
    %6 = vector.broadcast %2 : vector<1x16xf32> to vector<64x16xf32>
    %7 = arith.addf %5, %6 : vector<64x16xf32>
    %cst_7 = arith.constant 0.000000e+00 : f32
    %8 = vector.broadcast %cst_7 : f32 to vector<64x16xf32>
    %9 = arith.maximumf %7, %8 : vector<64x16xf32>
    %10 = vector.shape_cast %9 : vector<64x16xf32> to vector<4x16x16xf32>
    %c0_8 = arith.constant 0 : index
    %c0_9 = arith.constant 0 : index
    %c0_10 = arith.constant 0 : index
    %c0_11 = arith.constant 0 : index
    %11 = vector.load %arg4[%c0_8, %c0_9, %c0_10, %c0_11] : memref<4x2x16x16xf32, #tpu.memory_space<vmem>>, vector<4x1x16x16xf32>
    %12 = vector.shape_cast %11 : vector<4x1x16x16xf32> to vector<4x16x16xf32>
    %13 = vector.shape_cast %10 : vector<4x16x16xf32> to vector<4x1x16x16xf32>
    tpu.vector_store %arg4[%c0_8, %c0_9, %c0_10, %c0_11], %13 {strides = array<i32>} : memref<4x2x16x16xf32, #tpu.memory_space<vmem>>, vector<4x1x16x16xf32>,
    %c1 = arith.constant 1 : index
    %c0_12 = arith.constant 0 : index
    %c0_13 = arith.constant 0 : index
    %14 = vector.load %arg2[%c1, %c0_12, %c0_13] : memref<2x4x16xf32, #tpu.memory_space<vmem>>, vector<1x4x16xf32>
    %15 = vector.shape_cast %14 : vector<1x4x16xf32> to vector<4x16xf32>
    %cst_14 = arith.constant dense<0.000000e+00> : vector<64x16xf32>
    %16 = tpu.matmul %1, %15, %cst_14 {dimension_numbers = #tpu.dot_dimension_numbers<[1], [0], [0], [1], [0, 0, 1, 1], [], []>} : vector<64x4xf32>, vector<4x16xf32>, vector<64x16xf32> -> vector<64x16xf32>
    %17 = vector.broadcast %2 : vector<1x16xf32> to vector<64x16xf32>
    %18 = arith.addf %16, %17 : vector<64x16xf32>
    %cst_15 = arith.constant 0.000000e+00 : f32
    %19 = vector.broadcast %cst_15 : f32 to vector<64x16xf32>
    %20 = arith.maximumf %18, %19 : vector<64x16xf32>
    %21 = vector.shape_cast %20 : vector<64x16xf32> to vector<4x16x16xf32>
    %c0_16 = arith.constant 0 : index
    %c1_17 = arith.constant 1 : index
    %c0_18 = arith.constant 0 : index
    %c0_19 = arith.constant 0 : index
    %22 = vector.load %arg4[%c0_16, %c1_17, %c0_18, %c0_19] : memref<4x2x16x16xf32, #tpu.memory_space<vmem>>, vector<4x1x16x16xf32>
    %23 = vector.shape_cast %22 : vector<4x1x16x16xf32> to vector<4x16x16xf32>
    %24 = vector.shape_cast %21 : vector<4x16x16xf32> to vector<4x1x16x16xf32>
    tpu.vector_store %arg4[%c0_16, %c1_17, %c0_18, %c0_19], %24 {strides = array<i32>} : memref<4x2x16x16xf32, #tpu.memory_space<vmem>>, vector<4x1x16x16xf32>,
    return
  }
  func.func @transform_0(%arg0: i32) -> (i32, i32, i32) {
    %c0_i32 = arith.constant 0 : i32
    %c0_i32_0 = arith.constant 0 : i32
    %c0_i32_1 = arith.constant 0 : i32
    return %arg0, %c0_i32, %c0_i32_0 : i32, i32, i32
  }
  func.func @transform_1(%arg0: i32) -> (i32, i32, i32) {
    %c0_i32 = arith.constant 0 : i32
    %c0_i32_0 = arith.constant 0 : i32
    %c0_i32_1 = arith.constant 0 : i32
    %c0_i32_2 = arith.constant 0 : i32
    return %c0_i32, %c0_i32_0, %c0_i32_1 : i32, i32, i32
  }
  func.func @transform_2(%arg0: i32) -> (i32, i32) {
    %c0_i32 = arith.constant 0 : i32
    %c0_i32_0 = arith.constant 0 : i32
    %c0_i32_1 = arith.constant 0 : i32
    return %c0_i32, %c0_i32_0 : i32, i32
  }
  func.func @transform_3(%arg0: i32) -> (i32, i32, i32, i32) {
    %c0_i32 = arith.constant 0 : i32
    %c0_i32_0 = arith.constant 0 : i32
    %c0_i32_1 = arith.constant 0 : i32
    %c0_i32_2 = arith.constant 0 : i32
    return %arg0, %c0_i32, %c0_i32_0, %c0_i32_1 : i32, i32, i32, i32
  }
}

</mosaic_0001>

<bundles_post_ra>
// kernel: tile.8
= control target key start
LH: loop header
LB: loop body
LE: loop exit
PB: predicated region body
PF: predicated region fallthrough
CT: control target
= control target key end

     0   :  { %s22_s0 = inlined_call_operand.vmem [shape: f32[8], index: 0, kind: input, shape index: {}]   ;;  %s23_s1 = inlined_call_operand.vmem [shape: f32[2,8], index: 1, kind: output, shape index: {}]  }
   0x1   :  { %v4_v0 = vld [vmem:[%s22_s0] ss:$0 sm:$0xff] }
   0x2   :  { %5 = vst [vmem:[%s23_s1] sm:$0x3] %v4_v0 }

// kernel: tile.9
= control target key start
LH: loop header
LB: loop body
LE: loop exit
PB: predicated region body
PF: predicated region fallthrough
CT: control target
= control target key end

     0   :  { %vm8_vm0 = vcmask 64512   ;;  %vm14_vm1 = vcmask 130112   ;;  %s42_s0 = inlined_call_operand.vmem [shape: f32[2,8], index: 0, kind: input, shape index: {}]   ;;  %s43_s1 = inlined_call_operand.vmem [shape: f32[1,16], index: 1, kind: output, shape index: {}]  }
   0x1   :  { %v5_v0 = vld [vmem:[%s42_s0] sm:$0x3]  ;;  %s25_s0 = smov 8  }
   0x2   :  { %6 = vst [vmem:[#allocation1] sm:$0x3] %v5_v0 }
   0x9   :  { %v11_v1 = vld [vmem:[#allocation1 + $0x1] sm:$0x1]   ;;  %v7_v2 = vld [vmem:[#allocation1] sm:$0x1]  }
   0xa   :  { %12 = vrot.lane.b32.xlu0 %v11_v1, %s25_s0  ;;  %9 = vst.msk [vmem:[#allocation0] sm:$0x1] %vm8_vm0, %v7_v2  }
  0x7c   :  { %v13_v3 = vpop.permute.xlu0 %12  }
  0x7d   :  { %15 = vst.msk [vmem:[#allocation0] sm:$0x1] %vm14_vm1, %v13_v3  }
  0x84   :  { %v20_v4 = vld [vmem:[#allocation0] sm:$0x1] }
  0x85   :  { %23 = vst [vmem:[%s43_s1] sm:$0x1] %v20_v4 }

// kernel: upsample_nhwc.1
= control target key start
LH: loop header
LB: loop body
LE: loop exit
PB: predicated region body
PF: predicated region fallthrough
CT: control target
= control target key end

     0   :  { %s656_s12 = smov 0   ;;  %s736_s0 = inlined_call_operand.vmem [shape: f32[32,16,4], index: 0, kind: input, shape index: {}]   ;;  %s737_s1 = inlined_call_operand.vmem [shape: f32[2,4,16], index: 1, kind: input, shape index: {}]   ;;  %s738_s2 = inlined_call_operand.vmem [shape: f32[1,16], index: 2, kind: input, shape index: {}]   ;;  %s739_s3 = inlined_call_operand.vmem [shape: f32[32,2,16,16], index: 3, kind: output, shape index: {}]  }
   0x1 LB: > { %s531_s13 = sadd.s32 4294967295, %s634_s12   ;;  %p535_p0 = scmp.ge.s32.totalorder %s634_s12, 1  ;;  %s634_s12 = sphi %s656_s12, %s13_s12  }
   0x2   : > { %p139_p1 = scmp.lt.s32.totalorder %s634_s12, 9 }
   0x4   : > { %p140_p2 = pnand %p535_p0, %p139_p1 }
   0x5   : > { %s536_s18 = sshll.u32 (!%p140_p2), %s531_s13, 2 }
   0x6   : > { %143 = sbr.rel (%p140_p2) target bundleno = 228 (0xe4), region = 32  ;;  %p166_p3 = scmp.lt.s32.totalorder (!%p140_p2), %s536_s18, 31 }
   0xb   : > { %v188_v0 = vld [vmem:[%s737_s1] sm:$0xf]  ;;  %vm220_vm0 = vcmask 1043456   ;;  %v552_v1 = vld [vmem:[%s737_s1 + $0x4] sm:$0xf]  ;;  %s741_s18 = smov (!%p166_p3, %s536_s18), 31 }
   0xc   : > { %592 = vmatprep.subr.msk.mxu0 %vm220_vm0, %v188_v0  ;;  %606 = vmatprep.subr.msk.mxu1 %vm220_vm0, %v552_v1  ;;  %s572_s19 = sshll.u32 %s741_s18, 4  ;;  %vm195_vm1 = vcmask 31744   ;;  %v542_v10 = vld [vmem:[%s738_s2] ss:$0 sm:$0xff]  ;;  %s573_s25 = sshll.u32 %s741_s18, 5  ;;  %vm337_vm2 = vcmask 130048  }
   0xd   : > { %593 = vmatpush3.msk.msra.mxu0 %vm220_vm0, %v188_v0  ;;  %607 = vmatpush3.msk.msra.mxu1 %vm220_vm0, %v552_v1  ;;  %s170_s22 = scalar_lea.vmem %s736_s0, %s572_s19  ;;  %s699_s28 = scalar_lea.vmem %s739_s3, %s573_s25 }
   0xe   : > { %v179_v2 = vld [vmem:[%s170_s22] sm:$0xff]  ;;  %v180_v3 = vld [vmem:[%s170_s22 + $0x8] sm:$0xff]  ;;  %v181_v4 = vld [vmem:[%s170_s22 + $0x10] sm:$0xff] }
   0xf   : > { %594 = vmatprep.mubr.msk.f32.mxu0 %vm195_vm1, %v179_v2  ;;  %608 = vmatprep.mubr.msk.f32.mxu1 %vm195_vm1, %v179_v2  ;;  %v182_v5 = vld [vmem:[%s170_s22 + $0x18] sm:$0xff]  ;;  %v183_v6 = vld [vmem:[%s170_s22 + $0x20] sm:$0xff]  ;;  %v184_v7 = vld [vmem:[%s170_s22 + $0x28] sm:$0xff] }
  0x10   : > { %595 = vmatmul.mubr.msk.f32.vlgmr.msra.gmra.mxu0 %vm195_vm1, %v180_v3  ;;  %609 = vmatmul.mubr.msk.f32.vlgmr.msra.gmra.mxu1 %vm195_vm1, %v180_v3  ;;  %v185_v8 = vld [vmem:[%s170_s22 + $0x30] sm:$0xff]  ;;  %v186_v9 = vld [vmem:[%s170_s22 + $0x38] sm:$0xff] }
  0x11   : > { %597 = vmatprep.mubr.msk.f32.mxu0 %vm195_vm1, %v181_v4  ;;  %611 = vmatprep.mubr.msk.f32.mxu1 %vm195_vm1, %v181_v4 }
  0x14   : > { %598 = vmatmul.mubr.msk.f32.gmra.mxu0 %vm195_vm1, %v182_v5  ;;  %612 = vmatmul.mubr.msk.f32.gmra.mxu1 %vm195_vm1, %v182_v5 }
  0x15   : > { %600 = vmatprep.mubr.msk.f32.mxu0 %vm195_vm1, %v183_v6  ;;  %614 = vmatprep.mubr.msk.f32.mxu1 %vm195_vm1, %v183_v6 }
  0x18   : > { %601 = vmatmul.mubr.msk.f32.gmra.mxu0 %vm195_vm1, %v184_v7  ;;  %615 = vmatmul.mubr.msk.f32.gmra.mxu1 %vm195_vm1, %v184_v7 }
  0x19   : > { %603 = vmatprep.mubr.msk.f32.mxu0 %vm195_vm1, %v185_v8  ;;  %617 = vmatprep.mubr.msk.f32.mxu1 %vm195_vm1, %v185_v8 }
  0x1c   : > { %604 = vmatmul.mubr.msk.f32.gmra.mxu0 %vm195_vm1, %v186_v9  ;;  %618 = vmatmul.mubr.msk.f32.gmra.mxu1 %vm195_vm1, %v186_v9 }
  0xd0   : > { %v596_v11 = vpop.f32.mrf.mxu0  ;;  %v610_v12 = vpop.f32.mrf.mxu1 }
  0xd1   : > { %v296_v13 = vadd.f32 %v596_v11, %v542_v10  ;;  %v423_v14 = vadd.f32 %v610_v12, %v542_v10 }
  0xd2   : > { %v290_v15 = vpop.f32.mrf.mxu0  ;;  %v417_v16 = vpop.f32.mrf.mxu1 }
  0xd3   : > { %v330_v17 = vmax.f32 %v296_v13, 0.0  ;;  %v457_v18 = vmax.f32 %v423_v14, 0.0  ;;  %v291_v19 = vadd.f32 %v542_v10, %v290_v15  ;;  %v418_v20 = vadd.f32 %v542_v10, %v417_v16 }
  0xd4   : > { %v599_v21 = vpop.f32.mrf.mxu0  ;;  %v613_v22 = vpop.f32.mrf.mxu1 }
  0xd5   : > { %339 = vst.msk [vmem:[%s699_s28 + $0x8] sm:$0xff] %vm337_vm2, %v330_v17  ;;  %563 = vst.msk [vmem:[%s699_s28 + $0x18] sm:$0xff] %vm337_vm2, %v457_v18  ;;  %v329_v23 = vmax.f32 %v291_v19, 0.0  ;;  %v456_v24 = vmax.f32 %v418_v20, 0.0  ;;  %v306_v25 = vadd.f32 %v599_v21, %v542_v10  ;;  %v433_v26 = vadd.f32 %v613_v22, %v542_v10 }
  0xd6   : > { %v300_v27 = vpop.f32.mrf.mxu0  ;;  %v427_v28 = vpop.f32.mrf.mxu1 }
  0xd7   : > { %338 = vst.msk [vmem:[%s699_s28] sm:$0xff] %vm337_vm2, %v329_v23  ;;  %562 = vst.msk [vmem:[%s699_s28 + $0x10] sm:$0xff] %vm337_vm2, %v456_v24  ;;  %v332_v29 = vmax.f32 %v306_v25, 0.0  ;;  %v459_v30 = vmax.f32 %v433_v26, 0.0  ;;  %v301_v31 = vadd.f32 %v542_v10, %v300_v27  ;;  %v428_v32 = vadd.f32 %v542_v10, %v427_v28 }
  0xd8   : > { %v602_v33 = vpop.f32.mrf.mxu0  ;;  %v616_v34 = vpop.f32.mrf.mxu1 }
  0xd9   : > { %341 = vst.msk [vmem:[%s699_s28 + $0x28] sm:$0xff] %vm337_vm2, %v332_v29  ;;  %565 = vst.msk [vmem:[%s699_s28 + $0x38] sm:$0xff] %vm337_vm2, %v459_v30  ;;  %v331_v35 = vmax.f32 %v301_v31, 0.0  ;;  %v458_v36 = vmax.f32 %v428_v32, 0.0  ;;  %v316_v37 = vadd.f32 %v602_v33, %v542_v10  ;;  %v443_v38 = vadd.f32 %v616_v34, %v542_v10 }
  0xda   : > { %v310_v39 = vpop.f32.mrf.mxu0  ;;  %v437_v40 = vpop.f32.mrf.mxu1 }
  0xdb   : > { %340 = vst.msk [vmem:[%s699_s28 + $0x20] sm:$0xff] %vm337_vm2, %v331_v35  ;;  %564 = vst.msk [vmem:[%s699_s28 + $0x30] sm:$0xff] %vm337_vm2, %v458_v36  ;;  %v334_v41 = vmax.f32 %v316_v37, 0.0  ;;  %v461_v42 = vmax.f32 %v443_v38, 0.0  ;;  %v311_v43 = vadd.f32 %v542_v10, %v310_v39  ;;  %v438_v44 = vadd.f32 %v542_v10, %v437_v40 }
  0xdc   : > { %v605_v45 = vpop.f32.mrf.mxu0  ;;  %v619_v46 = vpop.f32.mrf.mxu1 }
  0xdd   : > { %343 = vst.msk [vmem:[%s699_s28 + $0x48] sm:$0xff] %vm337_vm2, %v334_v41  ;;  %567 = vst.msk [vmem:[%s699_s28 + $0x58] sm:$0xff] %vm337_vm2, %v461_v42  ;;  %v333_v47 = vmax.f32 %v311_v43, 0.0  ;;  %v460_v48 = vmax.f32 %v438_v44, 0.0  ;;  %v326_v49 = vadd.f32 %v605_v45, %v542_v10  ;;  %v453_v50 = vadd.f32 %v619_v46, %v542_v10 }
  0xde   : > { %v320_v51 = vpop.f32.mrf.mxu0  ;;  %v447_v52 = vpop.f32.mrf.mxu1 }
  0xdf   : > { %342 = vst.msk [vmem:[%s699_s28 + $0x40] sm:$0xff] %vm337_vm2, %v333_v47  ;;  %566 = vst.msk [vmem:[%s699_s28 + $0x50] sm:$0xff] %vm337_vm2, %v460_v48  ;;  %v336_v53 = vmax.f32 %v326_v49, 0.0  ;;  %v463_v54 = vmax.f32 %v453_v50, 0.0  ;;  %v321_v55 = vadd.f32 %v542_v10, %v320_v51  ;;  %v448_v56 = vadd.f32 %v542_v10, %v447_v52 }
  0xe1   : > { %345 = vst.msk [vmem:[%s699_s28 + $0x68] sm:$0xff] %vm337_vm2, %v336_v53  ;;  %569 = vst.msk [vmem:[%s699_s28 + $0x78] sm:$0xff] %vm337_vm2, %v463_v54  ;;  %v335_v57 = vmax.f32 %v321_v55, 0.0  ;;  %v462_v58 = vmax.f32 %v448_v56, 0.0 }
  0xe3   : > { %344 = vst.msk [vmem:[%s699_s28 + $0x60] sm:$0xff] %vm337_vm2, %v335_v57  ;;  %568 = vst.msk [vmem:[%s699_s28 + $0x70] sm:$0xff] %vm337_vm2, %v462_v58 }
  0xe4 PF: > { %s13_s12 = sadd.s32 1, %s634_s12  }
  0xe5   : > { %p10_p4 = scmp.ge.s32.totalorder %s13_s12, 10  }
  0xe7   :  { %12 = sbr.rel (!%p10_p4) target bundleno = 1 (0x1), region = 64 }

</bundles_post_ra>
